<compile_context>
chip_gen: v7x
topology: tpu7x:2x2x1
jax: 0.10.0
libtpu: 0.0.40
codegen_flags: <defaults>
</compile_context>

<pallas_src>
import jax
import jax.numpy as jnp
from jax.experimental import pallas as pl
from jax.experimental.pallas import tpu as pltpu


# Conservative VMEM budget for tile sizing: fits v7x's 64 MiB physical VMEM
# (v5e/v6e have 128 MiB, so this is safe everywhere).
_VMEM_BUDGET_BYTES = 40 * 1024 * 1024
# Raise the scoped VMEM limit above the 16 MiB (v5e) / 32 MiB (v6e/v7x)
# defaults; still well under every generation's physical capacity.
_VMEM_LIMIT_BYTES = 48 * 1024 * 1024
_MAX_TILE_LANES = 4096


def _transition_kernel(x_ref, w_ref, o_ref):
    # x_ref: (B, C_in, T) activation tile, w_ref: (C_out, C_in) resident weight,
    # o_ref: (B, C_out, T) output tile (lane axis = spatial).
    # B is 1 on the main path; a small static count on the small-HW path.
    w = w_ref[...]
    for b in range(x_ref.shape[0]):                 # static unroll (B is tiny)
        x = jnp.maximum(x_ref[b], 0)                # ReLU (VPU)
        y = jnp.dot(w, x, preferred_element_type=jnp.float32)   # MXU matmul
        o_ref[b] = y.astype(o_ref.dtype)


def _select_spatial_tile(c_in, c_out, hw, n, dtype_bytes):
    """Largest lane-dense spatial tile that fits double-buffered VMEM."""
    w_bytes = 2 * c_out * c_in * dtype_bytes                 # (double-buffered) weight
    per_lane = 2 * (c_in + c_out) * dtype_bytes              # dbl-buffered in + out per lane
    t_cap = (_VMEM_BUDGET_BYTES - w_bytes) // max(per_lane, 1)
    t_cap = max(128, min(_MAX_TILE_LANES, (t_cap // 128) * 128))
    # Lane-dense tile (multiple of 128) no bigger than needed to cover HW.
    t = min(t_cap, max(128, (hw // 128) * 128))
    # Keep >= 2 grid blocks when possible so v7x's two TensorCores both work.
    if n * pl.cdiv(hw, t) < 2 and hw >= 256:
        t = max(128, ((hw // 2) // 128) * 128)
    return t


def transition_block(x_nchw, weight, drop_rate=0.0):
    """x_nchw: (N, C_in, H, W); weight: (C_out, C_in) or (C_out, C_in, 1, 1)."""
    if drop_rate > 0.0:
        # TODO(synk): dropout path (dropRate > 0, training=True) not implemented.
        raise NotImplementedError("TransitionBlock Pallas kernel only supports dropRate=0.0")

    N, C_in, H, W = x_nchw.shape

    w = jnp.asarray(weight)
    if w.ndim == 4:
        assert w.shape[2:] == (1, 1), f"expected 1x1 conv kernel, got {w.shape}"
        w = w.reshape(w.shape[0], w.shape[1])
    assert w.ndim == 2 and w.shape[1] == C_in, f"bad weight shape {w.shape} for C_in={C_in}"
    C_out = w.shape[0]
    # Keep both matmul operands in the activation dtype (preserves bf16 MXU
    # path); accumulation stays f32 via preferred_element_type. No-op for f32.
    w = w.astype(x_nchw.dtype)

    HW = H * W
    # Free reshape (row-major merge of last two dims), no HBM transpose pass.
    x3 = x_nchw.reshape(N, C_in, HW)

    dtype_bytes = jnp.dtype(x_nchw.dtype).itemsize
    cost = pl.CostEstimate(
        flops=2 * N * HW * C_in * C_out,
        bytes_accessed=N * HW * (C_in + C_out) * dtype_bytes + C_in * C_out * dtype_bytes,
        transcendentals=0,
    )

    if HW >= 128:
        # --- Main path: tile the spatial (lane) axis, one image per step. ---
        t = _select_spatial_tile(C_in, C_out, HW, N, dtype_bytes)
        grid = (N, pl.cdiv(HW, t))
        out3 = pl.pallas_call(
            _transition_kernel,
            out_shape=jax.ShapeDtypeStruct((N, C_out, HW), x_nchw.dtype),
            grid_spec=pltpu.PrefetchScalarGridSpec(
                num_scalar_prefetch=0,
                grid=grid,
                in_specs=[
                    pl.BlockSpec((1, C_in, t), lambda n, s: (n, 0, s)),
                    pl.BlockSpec((C_out, C_in), lambda n, s: (0, 0)),  # resident weight
                ],
                out_specs=pl.BlockSpec((1, C_out, t), lambda n, s: (n, 0, s)),
            ),
            compiler_params=pltpu.CompilerParams(
                dimension_semantics=("parallel", "parallel"),
                vmem_limit_bytes=_VMEM_LIMIT_BYTES,
            ),
            cost_estimate=cost,
        )(x3, w)
    else:
        # --- Small-HW path: block several batch images per grid step. ---
        w_bytes = 2 * C_out * C_in * dtype_bytes
        per_img = 2 * (C_in + C_out) * HW * dtype_bytes
        b_cap = max(1, (_VMEM_BUDGET_BYTES - w_bytes) // max(per_img, 1))
        b_n = int(min(N, b_cap, 8))
        if N >= 2:
            b_n = min(b_n, (N + 1) // 2)  # keep >= 2 grid blocks for v7x megacore
        grid = (pl.cdiv(N, b_n),)
        out3 = pl.pallas_call(
            _transition_kernel,
            out_shape=jax.ShapeDtypeStruct((N, C_out, HW), x_nchw.dtype),
            grid_spec=pltpu.PrefetchScalarGridSpec(
                num_scalar_prefetch=0,
                grid=grid,
                in_specs=[
                    pl.BlockSpec((b_n, C_in, HW), lambda n: (n, 0, 0)),
                    pl.BlockSpec((C_out, C_in), lambda n: (0, 0)),  # resident weight
                ],
                out_specs=pl.BlockSpec((b_n, C_out, HW), lambda n: (n, 0, 0)),
            ),
            compiler_params=pltpu.CompilerParams(
                dimension_semantics=("parallel",),
                vmem_limit_bytes=_VMEM_LIMIT_BYTES,
            ),
            cost_estimate=cost,
        )(x3, w)

    return out3.reshape(N, C_out, H, W)  # free reshape back to NCHW


if __name__ == "__main__":
    key = jax.random.PRNGKey(0)
    k_x, k_w, k_x2 = jax.random.split(key, 3)

    # --- Main-path shapes (HW = 256 >= 128) ---
    N, C_in, H, W = 2, 4, 16, 16
    C_out = 8

    x = jax.random.normal(k_x, (N, C_in, H, W), dtype=jnp.float32)
    # deterministic conv weight init, shape (C_out, C_in, 1, 1) like PyTorch
    fan_in = C_in * 1 * 1
    bound = 1.0 / (fan_in ** 0.5)
    weight = jax.random.uniform(k_w, (C_out, C_in, 1, 1), dtype=jnp.float32,
                                minval=-bound, maxval=bound)

    out = transition_block(x, weight)
    out = jax.block_until_ready(out)

    w2d = weight.reshape(C_out, C_in)
    ref = jnp.einsum("nchw,oc->nohw", jnp.maximum(x, 0.0), w2d)
    assert out.shape == (N, C_out, H, W)
    assert jnp.allclose(out, ref, atol=1e-5), "mismatch vs reference (main path)"

    # --- Small-HW path shapes (HW = 64 < 128): exercises batch-blocked path ---
    Hs = Ws = 8
    xs = jax.random.normal(k_x2, (N, C_in, Hs, Ws), dtype=jnp.float32)
    outs = transition_block(xs, weight)
    outs = jax.block_until_ready(outs)
    refs = jnp.einsum("nchw,oc->nohw", jnp.maximum(xs, 0.0), w2d)
    assert outs.shape == (N, C_out, Hs, Ws)
    assert jnp.allclose(outs, refs, atol=1e-5), "mismatch vs reference (small-HW path)"

    print("KERNEL_OK")
</pallas_src>

<mosaic_0001>
module attributes {stable_mosaic.version = 11 : i64} {
  func.func @_transition_kernel(%arg0: i32, %arg1: i32, %arg2: memref<1x4x256xf32, #tpu.memory_space<vmem>>, %arg3: memref<8x4xf32, #tpu.memory_space<vmem>>, %arg4: memref<1x8x256xf32, #tpu.memory_space<vmem>>) attributes {dimension_semantics = [#tpu.dimension_semantics<parallel>, #tpu.dimension_semantics<parallel>], iteration_bounds = array<i64: 2, 1>, scalar_prefetch = 0 : i64, scratch_operands = 0 : i64, tpu.core_type = #tpu.core_type<tc>, window_params = [{transform_indices = @transform_0, window_bounds = array<i64: 1, 4, 256>}, {pipeline_mode = #tpu.pipeline_mode<synchronous>, transform_indices = @transform_1, window_bounds = array<i64: 8, 4>}, {transform_indices = @transform_2, window_bounds = array<i64: 1, 8, 256>}]} {
    %c0 = arith.constant 0 : index
    %c0_0 = arith.constant 0 : index
    %0 = vector.load %arg3[%c0, %c0_0] : memref<8x4xf32, #tpu.memory_space<vmem>>, vector<8x4xf32>
    %c0_1 = arith.constant 0 : index
    %c0_2 = arith.constant 0 : index
    %c0_3 = arith.constant 0 : index
    %1 = vector.load %arg2[%c0_1, %c0_2, %c0_3] : memref<1x4x256xf32, #tpu.memory_space<vmem>>, vector<1x4x256xf32>
    %2 = vector.shape_cast %1 : vector<1x4x256xf32> to vector<4x256xf32>
    %cst = arith.constant 0.000000e+00 : f32
    %3 = vector.broadcast %cst : f32 to vector<4x256xf32>
    %4 = arith.maximumf %2, %3 : vector<4x256xf32>
    %cst_4 = arith.constant dense<0.000000e+00> : vector<8x256xf32>
    %5 = tpu.matmul %0, %4, %cst_4 {dimension_numbers = #tpu.dot_dimension_numbers<[1], [0], [0], [1], [0, 0, 1, 1], [], []>} : vector<8x4xf32>, vector<4x256xf32>, vector<8x256xf32> -> vector<8x256xf32>
    %c0_5 = arith.constant 0 : index
    %c0_6 = arith.constant 0 : index
    %c0_7 = arith.constant 0 : index
    %6 = vector.load %arg4[%c0_5, %c0_6, %c0_7] : memref<1x8x256xf32, #tpu.memory_space<vmem>>, vector<1x8x256xf32>
    %7 = vector.shape_cast %6 : vector<1x8x256xf32> to vector<8x256xf32>
    %8 = vector.shape_cast %5 : vector<8x256xf32> to vector<1x8x256xf32>
    tpu.vector_store %arg4[%c0_5, %c0_6, %c0_7], %8 {strides = array<i32>} : memref<1x8x256xf32, #tpu.memory_space<vmem>>, vector<1x8x256xf32>,
    return
  }
  func.func @transform_0(%arg0: i32, %arg1: i32) -> (i32, i32, i32) {
    %c0_i32 = arith.constant 0 : i32
    %c0_i32_0 = arith.constant 0 : i32
    return %arg0, %c0_i32, %arg1 : i32, i32, i32
  }
  func.func @transform_1(%arg0: i32, %arg1: i32) -> (i32, i32) {
    %c0_i32 = arith.constant 0 : i32
    %c0_i32_0 = arith.constant 0 : i32
    %c0_i32_1 = arith.constant 0 : i32
    return %c0_i32, %c0_i32_0 : i32, i32
  }
  func.func @transform_2(%arg0: i32, %arg1: i32) -> (i32, i32, i32) {
    %c0_i32 = arith.constant 0 : i32
    %c0_i32_0 = arith.constant 0 : i32
    return %arg0, %c0_i32, %arg1 : i32, i32, i32
  }
}

</mosaic_0001>

<bundles_post_ra>
// kernel: tpu_custom_call.1
= control target key start
LH: loop header
LB: loop body
LE: loop exit
PB: predicated region body
PF: predicated region fallthrough
CT: control target
= control target key end

     0   :  { %7 = vsyncpa [#allocation3], 0  ;;  %s759_s0 = inlined_call_operand.hbm [shape: f32[2,4,256], index: 0, kind: input, shape index: {}]   ;;  %s760_s1 = inlined_call_operand.vmem [shape: f32[8,4], index: 1, kind: input, shape index: {}]   ;;  %s761_s2 = inlined_call_operand.hbm [shape: f32[2,8,256], index: 2, kind: output, shape index: {}]  }
   0x1   :  { %9 = vsyncpa [#allocation3 + $0x1], 0 }
   0x2   :  { %10 = vsyncpa [#allocation4], 0 }
   0x3   :  { %12 = vsyncpa [#allocation4 + $0x1], 0  ;;  %s583_s9 = smov 0   ;;  %s585_s10 = smov 0  }
   0x4   :  { %s587_s11 = smov 0   ;;  %s589_s12 = smov 0  }
   0x5   :  { %s591_s13 = smov 0   ;;  %s593_s14 = smov 0  }
   0x6 LB: > { %s368_s15 = sadd.s32 4294967295, %s563_s14   ;;  %s369_s16 = sadd.s32 4294967294, %s563_s14   ;;  %s563_s14 = sphi %s593_s14, %s18_s14   ;;  %s559_s13 = sphi %s591_s13, %s777_s13   ;;  %s555_s12 = sphi %s589_s12, %s776_s12   ;;  %s551_s11 = sphi %s587_s11, %s775_s11   ;;  %s547_s10 = sphi %s585_s10, %s774_s10   ;;  %s543_s9 = sphi %s583_s9, %s773_s9  }
   0x7   : > { %s30_s17 = sadd.s32 1, %s559_s13  ;;  %s39_s18 = sadd.s32 1, %s551_s11 }
   0x8   : > { %p32_p0 = scmp.ge.s32.totalorder %s30_s17, 2  ;;  %p46_p1 = scmp.ne.s32.totalorder %s551_s11, %s547_s10 }
   0x9   : > { %p47_p2 = scmp.eq.s32.totalorder %s563_s14, 0  ;;  %p52_p3 = scmp.ne.s32.totalorder %s547_s10, %s543_s9 }
   0xa   : > { %s779_s17 = smov (%p32_p0, %s30_s17), 0  ;;  %p53_p5 = scmp.eq.s32.totalorder %s368_s15, 0 }
   0xb   : > { %p624_p4 = por %p47_p2, %p46_p1  ;;  %s34_s20 = ssub.s32 %s559_s13, %s779_s17 }
   0xc   : > { %p99_p6 = scmp.eq.s32.totalorder %s368_s15, 1  ;;  %p37_p7 = scmp.eq.s32.totalorder %s34_s20, 0 }
   0xd   : > { %p630_p8 = por %p53_p5, %p52_p3  ;;  %p105_p10 = scmp.eq.s32.totalorder %s369_s16, 1 }
   0xe   : > { %p634_p9 = por %p99_p6, %p46_p1  ;;  %p400_p13 = scmp.lt.s32.totalorder %s563_s14, 2 }
   0xf   : > { %s639_s23 = scalar_select %p37_p7, %s551_s11, %s39_s18  }
  0x10   : > { %s765_s22 = scalar_select %p634_p9, 1, 0 }
  0x11   : > { %p641_p11 = por %p105_p10, %p52_p3  ;;  %s128_s25 = sand.u32 1, %s551_s11  }
  0x12   : > { %s372_s26 = sshll.u32 %s128_s25, 3  ;;  %s386_s27 = sshll.u32 %s559_s13, 7 }
  0x13   : > { %s766_s24 = scalar_select %p641_p11, 1, 0 }
  0x14   : > { %s652_s30 = scalar_lea.hbm %s759_s0, %s386_s27  ;;  %s132_s3 = scalar_lea.vmem [#allocation2], %s372_s26 }
  0x15   : > { %s142_s4 = sshll.u32 %s132_s3, 4  ;;  %p658_p0 = pnand %p400_p13, %p624_p4  ;;  %s654_s4 = int_to_ptr.vmem [resolvable:$true] %s142_s4 }
  0x16   : > { %s129_s6 = scalar_lea.sflag [#allocation3], %s128_s25  ;;  %s451_s7 = scalar_lea.hbm %s652_s30, 128 }
  0x17   : > { %p452_p3 = scmp.ne.s32.totalorder %s652_s30, %s451_s7  ;;  %p453_p5 = pneg %p658_p0 }
  0x18   : > { %s456_s16 = scalar_lea.hbm %s759_s0, 256  ;;  %p457_p4 = scmp.lt.u32.totalorder %s652_s30, %s759_s0 }
  0x19   : > { %p454_p6 = pnand %p453_p5, %p452_p3  ;;  %p458_p10 = scmp.lt.u32.totalorder %s456_s16, %s451_s7 }
  0x1a   : > { %p460_p12 = scmp.lt.u32.totalorder %s451_s7, %s652_s30 }
  0x1b   : > { %p455_p7 = pneg %p454_p6  ;;  %p459_p13 = por %p458_p10, %p457_p4 }
  0x1d   : > { %p461_p1 = por %p460_p12, %p459_p13 }
  0x1f   : > { %p462_p2 = pnand %p461_p1, %p455_p7 }
  0x21   : > { %465 = shalt.err (!%p462_p2)
}
  0x22   : > { %s466_s20 = scalar_lea.vmem %s654_s4, 128  ;;  %s565_s25 = smov [#allocation2]  }
  0x23   : > { %p467_p3 = scmp.ne.s32.totalorder %s654_s4, %s466_s20  ;;  %s471_s26 = sshll.u32 %s565_s25, 4  ;;  %s472_s26 = int_to_ptr.vmem [resolvable:$false] %s471_s26 }
  0x24   : > { %s473_s27 = scalar_lea.vmem %s472_s26, 256  ;;  %p474_p9 = scmp.lt.s32.totalorder %s654_s4, %s472_s26 }
  0x25   : > { %p469_p6 = pnand %p467_p3, %p453_p5  ;;  %p475_p4 = scmp.lt.s32.totalorder %s473_s27, %s466_s20 }
  0x27   : > { %p470_p11 = pneg %p469_p6  ;;  %p476_p10 = por %p475_p4, %p474_p9 }
  0x29   : > { %p477_p12 = pnand %p476_p10, %p470_p11 }
  0x2b   : > { %480 = shalt.err (!%p477_p12)
}
  0x2c   : > { %395 = dma.hbm_to_vmem [thread:$0]  (!%p658_p0), %s652_s30, 128, %s654_s4, %s129_s6  }
  0x2d   : > { %p768_p1 = scmp.lt.s32.totalorder %s563_s14, 3  ;;  %p769_p2 = scmp.ge.s32.totalorder %s563_s14, 1 }
  0x2f   : > { %p148_p5 = pnand %p769_p2, %p768_p1 }
  0x30   : > { %s694_s28 = sand.u32 (!%p148_p5), 1, %s547_s10  }
  0x31   : > { %151 = sbr.rel (%p148_p5) target bundleno = 291 (0x123), region = 28  ;;  %s376_s29 = sshll.u32 (!%p148_p5), %s694_s28, 3 }
  0x32   : > { %s154_s3 = scalar_lea.sflag (!%p148_p5), [#allocation3], %s694_s28  ;;  %s157_s7 = scalar_lea.vmem (!%p148_p5), [#allocation2], %s376_s29 }
  0x38   : > { %534 = dma.done.wait (%p630_p8), %s154_s3, 128  }
  0x39   : > { %536 = vsyncadd (%p630_p8), %s154_s3, 4294967168  ;;  %v566_v0 = vmov 0.0   ;;  %v181_v1 = vld [vmem:[%s157_s7] sm:$0xff]  ;;  %vm189_vm0 = vcmask 1043456   ;;  %vm185_vm1 = vcmask 31744   ;;  %s377_s21 = sshll.u32 %s694_s28, 4 }
  0x3a   : > { %258 = vmatprep.mubr.f32.mxu0 %v566_v0  ;;  %v182_v2 = vmax.f32 %v181_v1, 0.0  ;;  %v180_v4 = vld [vmem:[%s760_s1] sm:$0xff]  ;;  %s177_s5 = scalar_lea.vmem [#allocation5], %s377_s21  ;;  %s387_s8 = sshll.u32 %s555_s12, 8 }
  0x3b   : > { %s284_s6 = sshll.u32 %s177_s5, 4  ;;  %s712_s18 = scalar_lea.hbm %s761_s2, %s387_s8  ;;  %s707_s6 = int_to_ptr.vmem [resolvable:$true] %s284_s6 }
  0x3c   : > { %v184_v3 = vcombine.high %v182_v2, %v182_v2  ;;  %s268_s19 = scalar_lea.sflag [#allocation4], %s694_s28  ;;  %s481_s20 = scalar_lea.vmem %s707_s6, 256 }
  0x3d   : > { %p482_p8 = scmp.ne.s32.totalorder %s707_s6, %s481_s20  ;;  %p770_p9 = scmp.ne.s32.totalorder %s765_s22, 0 }
  0x3e   : > { %378 = vmatprep.subr.msk.mxu0 %vm189_vm0, %v184_v3  ;;  %s567_s12 = smov [#allocation5]  }
  0x3f   : > { %379 = vmatpush1.msk.msra.mxu0 %vm189_vm0, %v182_v2  ;;  %p483_p11 = pnand %p482_p8, %p770_p9  ;;  %s485_s25 = sshll.u32 %s567_s12, 4  ;;  %s486_s25 = int_to_ptr.vmem [resolvable:$false] %s485_s25 }
  0x40   : > { %380 = vmatmul.mubr.msk.f32.vlgmr.msra.gmra.mrb[0].mxu0 %vm185_vm1, %v180_v4  ;;  %s487_s26 = scalar_lea.vmem %s486_s25, 512  ;;  %p488_p7 = scmp.lt.s32.totalorder %s707_s6, %s486_s25 }
  0x41   : > { %p484_p0 = pneg %p483_p11  ;;  %p489_p13 = scmp.lt.s32.totalorder %s487_s26, %s481_s20 }
  0x43   : > { %p490_p3 = por %p489_p13, %p488_p7 }
  0x45   : > { %p491_p6 = pnand %p490_p3, %p484_p0 }
 0x113   : > { %v260_v5 = vpop.f32.mrb[0].mxu0 }
 0x114   : > { %265 = vst [vmem:[%s177_s5] sm:$0xff] %v260_v5  ;;  %v262_v6 = vpop.f32.mrb[1].mxu0 }
 0x115   : > { %266 = vst [vmem:[%s177_s5 + $0x8] sm:$0xff] %v262_v6 }
 0x116   : > { %494 = shalt.err (!%p491_p6)
}
 0x117   : > { %s495_s27 = scalar_lea.hbm %s712_s18, 256  ;;  %s499_s3 = scalar_lea.hbm %s761_s2, 512 }
 0x118   : > { %p496_p4 = scmp.ne.s32.totalorder %s712_s18, %s495_s27  ;;  %p500_p1 = scmp.lt.u32.totalorder %s712_s18, %s761_s2 }
 0x119   : > { %p501_p2 = scmp.lt.u32.totalorder %s499_s3, %s495_s27  ;;  %p503_p8 = scmp.lt.u32.totalorder %s495_s27, %s712_s18 }
 0x11a   : > { %p497_p10 = pnand %p496_p4, %p770_p9 }
 0x11b   : > { %p502_p5 = por %p501_p2, %p500_p1 }
 0x11c   : > { %p498_p12 = pneg %p497_p10 }
 0x11d   : > { %p504_p11 = por %p503_p8, %p502_p5 }
 0x11f   : > { %p505_p0 = pnand %p504_p11, %p498_p12 }
 0x121   : > { %508 = shalt.err (!%p505_p0)
}
 0x122   : > { %390 = dma.vmem_to_hbm [thread:$0]  (%p770_p9), %s707_s6, 256, %s712_s18, %s268_s19  }
 0x123 PF: > { %s296_s4 = sand.u32 1, %s543_s9   ;;  %p771_p7 = scmp.ne.s32.totalorder %s766_s24, 0 }
 0x124   : > { %p772_p13 = scmp.ge.s32.totalorder %s563_s14, 2  ;;  %s297_s21 = scalar_lea.sflag [#allocation4], %s296_s4 }
 0x126   : > { %p397_p3 = pnand %p772_p13, %p771_p7 }
 0x128   : > { %538 = dma.done.wait (!%p397_p3), %s297_s21, 256  }
 0x129   : > { %540 = vsyncadd (!%p397_p3), %s297_s21, 4294967040  ;;  %s18_s14 = sadd.s32 1, %s563_s14   ;;  %s773_s9 = smov %s547_s10 }
 0x12a   : > { %p15_p6 = scmp.ge.s32.totalorder %s18_s14, 4   ;;  %s774_s10 = smov %s551_s11 }
 0x12b   : > { %s775_s11 = smov %s639_s23  ;;  %s776_s12 = smov %s559_s13 }
 0x12c   : > { %s777_s13 = smov %s779_s17  ;;  %17 = sbr.rel (!%p15_p6) target bundleno = 6 (0x6), region = 73 }
 0x133   :  { %302 = vsyncpa [#allocation3], 1 }
 0x134   :  { %304 = vsyncpa [#allocation3 + $0x1], 1 }
 0x135   :  { %305 = vsyncpa [#allocation4], 1 }
 0x136   :  { %307 = vsyncpa [#allocation4 + $0x1], 1 }

</bundles_post_ra>
